<compile_context>
chip_gen: v5e
topology: v5e:2x2
jax: 0.10.0
libtpu: 0.0.40
codegen_flags: <defaults>
</compile_context>

<pallas_src>
import functools

import jax
import jax.numpy as jnp
from jax.experimental import pallas as pl
from jax.experimental.pallas import tpu as pltpu


def _round_up(x, m):
    return (x + m - 1) // m * m


def _cdiv(a, b):
    return -(-a // b)


def _vmem_capacity_bytes():
    """Physical per-core VMEM; conservative 64 MiB (v7x) if the query fails."""
    try:
        cap = getattr(pltpu.get_tpu_info(), "vmem_capacity_bytes", None)
        if cap:
            return int(cap)
    except Exception:
        pass
    return 64 * 1024 * 1024


def _choose_block_rows(n_anchor, n_cols, d, itemsize):
    """Anchor-tile width TB (lane axis): generation-aware, 128-aligned, even grid."""
    n8 = _round_up(max(n_anchor, 1), 8)
    budget = (_vmem_capacity_bytes() * 3) // 4            # ~96 MiB v5e/v6e, ~48 MiB v7x
    resident = 2 * itemsize * n_cols * d + 8 * n_cols     # contrast (<=2 bufs) + col labels
    per_col = 2 * itemsize * d + 16 * n_cols + 64         # dbl-buffered anchor col + (N,TB) f32 temps
    tb_max = max(128, min(2048, ((budget - resident) // max(per_col, 1)) // 128 * 128))
    if n8 < 256 and n8 <= tb_max:
        return n8                                          # tiny problem: one tile covers everything
    tiles = max(2, _cdiv(n8, tb_max))
    if tiles % 2:
        tiles += 1                                         # even tile count: v7x dual-TC balance
    return _round_up(_cdiv(n8, tiles), 128)


def _supcon_kernel(row_lab_ref, col_lab_ref, anchor_t_ref, contrast_ref,
                   loss_ref, *, inv_temp, block_rows):
    """One (N, TB) column-tile of the transposed similarity matrix.

    row_lab_ref  : (1, TB)  int32     labels of the TB anchors in this tile (-1 = pad)
    col_lab_ref  : (N, 1)   int32     labels of all contrast rows (resident)
    anchor_t_ref : (D, TB)  f32/bf16  anchors of this tile, feature-major
    contrast_ref : (N, D)   f32/bf16  full contrast feature set (resident)
    loss_ref     : (1, TB)  f32       per-anchor SupCon loss (lane-dense)
    """
    i = pl.program_id(0)

    # s[c, r] = <contrast_c, anchor_r> / T  --  MXU, natural layout for both operands.
    s = jnp.dot(contrast_ref[...], anchor_t_ref[...],
                preferred_element_type=jnp.float32) * inv_temp          # (N, TB) f32

    rl = row_lab_ref[...]                                                # (1, TB)
    cl = col_lab_ref[...]                                                # (N, 1)
    row_ids = i * block_rows + jax.lax.broadcasted_iota(jnp.int32, rl.shape, 1)
    col_ids = jax.lax.broadcasted_iota(jnp.int32, cl.shape, 0)
    not_self = col_ids != row_ids                                        # exclude self-contrast
    pos = (cl == rl) & not_self                                          # positives mask

    # Masked, numerically-stable log-sum-exp over the non-self rows.
    # exp(-inf) == 0, so a single where covers both the max and the sum.
    s_masked = jnp.where(not_self, s, -jnp.inf)
    m = jnp.max(s_masked, axis=0, keepdims=True)                         # (1, TB)
    lse = m + jnp.log(jnp.sum(jnp.exp(s_masked - m), axis=0, keepdims=True))

    pos_cnt = jnp.sum(pos.astype(jnp.float32), axis=0, keepdims=True)    # (1, TB)
    pos_logit = jnp.sum(jnp.where(pos, s, 0.0), axis=0, keepdims=True)   # (1, TB)

    # loss = -(mean log-prob over positives) = lse - sum(pos*s)/sum(pos).
    # pos_cnt == 0 (no positives) gives NaN, matching the reference's 0/0; padded
    # anchors (label -1) hit this path and are sliced off in the wrapper.
    loss_ref[...] = lse - pos_logit / pos_cnt


def supcon_loss(features, labels=None, *, temperature=0.07, contrast_mode="all",
                base_temperature=0.07, block_rows=None):
    """JAX/Pallas equivalent of SupConLoss.forward (labels / SimCLR paths).

    features: (bsz, n_views, ...) float (f32 or bf16); labels: (bsz,) int or None.
    Note: this module variant never rescales by temperature / base_temperature,
    so `base_temperature` is accepted only for API parity.
    """
    del base_temperature
    if features.ndim < 3:
        raise ValueError("`features` needs to be [bsz, n_views, ...]")
    bsz, n_views = features.shape[0], features.shape[1]
    feats = features.reshape(bsz, n_views, -1)
    d = feats.shape[-1]
    itemsize = jnp.dtype(feats.dtype).itemsize

    if labels is None:
        # SimCLR degenerate case: mask = eye(bsz)  <=>  each sample is its own class.
        labels = jnp.arange(bsz, dtype=jnp.int32)
    labels = labels.astype(jnp.int32).reshape(bsz)

    # contrast_feature = cat(unbind(features, dim=1), dim=0): view-major row order.
    contrast = jnp.transpose(feats, (1, 0, 2)).reshape(n_views * bsz, d)   # (N, D)
    n_cols = n_views * bsz
    col_labels = jnp.tile(labels, n_views).reshape(n_cols, 1)

    if contrast_mode == "one":
        anchor = feats[:, 0, :]
        anchor_count = 1
    elif contrast_mode == "all":
        anchor = contrast
        anchor_count = n_views
    else:
        raise ValueError(f"Unknown mode: {contrast_mode}")
    n_anchor = anchor_count * bsz
    row_labels = jnp.tile(labels, anchor_count)

    # ---- anchor tiling along the lane axis ---------------------------------
    n8 = _round_up(n_anchor, 8)
    if block_rows is not None:
        tb = int(block_rows)
        # Tiled case needs TB % 128 == 0 for a lane-dense output block; a single
        # tile equal to the (padded) anchor count is always legal.
        tb = n8 if tb >= n8 else _round_up(max(tb, 128), 128)
    else:
        tb = _choose_block_rows(n_anchor, n_cols, d, itemsize)

    n_pad = _round_up(n_anchor, tb)
    anchor_t = jnp.transpose(anchor, (1, 0))                               # (D, n_anchor)
    if n_pad != n_anchor:
        # Padded anchors get label -1 -> no positives -> NaN loss, sliced off below.
        anchor_t = jnp.pad(anchor_t, ((0, 0), (0, n_pad - n_anchor)))
        row_labels = jnp.pad(row_labels, (0, n_pad - n_anchor), constant_values=-1)
    row_labels = row_labels.reshape(1, n_pad)

    kernel = functools.partial(_supcon_kernel,
                               inv_temp=float(1.0 / temperature),
                               block_rows=tb)

    # Advisory roofline hints for the surrounding XLA schedule.
    cost = pl.CostEstimate(
        flops=int(2 * n_pad * n_cols * d + 8 * n_pad * n_cols),
        transcendentals=int(n_pad * n_cols + 2 * n_pad),
        bytes_accessed=int(itemsize * (n_pad * d + n_cols * d)
                           + 4 * (2 * n_pad + n_cols)))

    # Scoped-VMEM request: actual footprint + slack, capped at ~75% of the
    # physical per-core VMEM (=> ~96 MiB on v5e/v6e, ~48 MiB on v7x headroom).
    est_bytes = (2 * itemsize * n_cols * d          # resident contrast (<= 2 bufs)
                 + 8 * n_cols                       # column labels
                 + 2 * itemsize * d * tb            # double-buffered anchor tile
                 + 8 * tb                           # double-buffered row labels
                 + 16 * n_cols * tb                 # live (N, TB) f32 temporaries
                 + 8 * tb                           # double-buffered output block
                 + (2 << 20))                       # compiler internal scratch slack
    vmem_limit = int(min(max(est_bytes, 32 * 1024 * 1024),
                         (_vmem_capacity_bytes() * 3) // 4))

    def build(single_buffer_resident):
        def resident_spec(shape):
            if single_buffer_resident:
                # Grid-invariant operands: single-buffer to halve their VMEM cost.
                return pl.BlockSpec(shape, lambda i: (0, 0),
                                    pipeline_mode=pl.Buffered(1))
            return pl.BlockSpec(shape, lambda i: (0, 0))

        return pl.pallas_call(
            kernel,
            out_shape=jax.ShapeDtypeStruct((1, n_pad), jnp.float32),
            grid=(n_pad // tb,),
            in_specs=[
                pl.BlockSpec((1, tb), lambda i: (0, i)),   # anchor labels (pipelined)
                resident_spec((n_cols, 1)),                # contrast labels (resident)
                pl.BlockSpec((d, tb), lambda i: (0, i)),   # anchor features^T (pipelined)
                resident_spec((n_cols, d)),                # contrast features (resident)
            ],
            out_specs=pl.BlockSpec((1, tb), lambda i: (0, i)),   # lane-dense losses
            compiler_params=pltpu.CompilerParams(
                dimension_semantics=("parallel",),          # v7x: shard tiles across both TCs
                vmem_limit_bytes=vmem_limit),
            cost_estimate=cost,
        )

    try:
        per_row = build(True)(row_labels, col_labels, anchor_t, contrast)
    except Exception:
        # This Pallas build rejects pl.Buffered(1); default double-buffering.
        per_row = build(False)(row_labels, col_labels, anchor_t, contrast)

    # loss.view(anchor_count, batch_size).mean()  ==  mean over all real anchors.
    return jnp.mean(per_row[0, :n_anchor])


def _reference_supcon(features, labels=None, temperature=0.07, contrast_mode="all"):
    """Pure-JAX reference mirroring the PyTorch SupConLoss.forward exactly."""
    bsz, n_views = features.shape[0], features.shape[1]
    feats = features.reshape(bsz, n_views, -1).astype(jnp.float32)
    if labels is None:
        mask = jnp.eye(bsz, dtype=jnp.float32)
    else:
        lab = labels.reshape(-1, 1)
        mask = (lab == lab.T).astype(jnp.float32)
    contrast_count = n_views
    contrast_feature = jnp.concatenate([feats[:, v] for v in range(n_views)], axis=0)
    if contrast_mode == "one":
        anchor_feature = feats[:, 0]
        anchor_count = 1
    else:
        anchor_feature = contrast_feature
        anchor_count = contrast_count
    logits = anchor_feature @ contrast_feature.T / temperature
    mask = jnp.tile(mask, (anchor_count, contrast_count))
    n_anchor = bsz * anchor_count
    diag = jnp.arange(n_anchor)
    logits_mask = jnp.ones_like(mask).at[diag, diag].set(0.0)
    mask = mask * logits_mask
    exp_logits = jnp.exp(logits) * logits_mask
    log_prob = logits - jnp.log(exp_logits.sum(1, keepdims=True))
    mean_log_prob_pos = (mask * log_prob).sum(1) / mask.sum(1)
    loss = -mean_log_prob_pos
    return loss.reshape(anchor_count, bsz).mean()


if __name__ == "__main__":
    temperature = 0.07
    key = jax.random.PRNGKey(0)
    k1, k2, k3, k4 = jax.random.split(key, 4)

    # --- small shapes: bsz=8, n_views=2, dim=32 (single-tile path) ----------
    bsz, n_views, dim = 8, 2, 32
    feats = jax.random.normal(k1, (bsz, n_views, dim), dtype=jnp.float32)
    feats = feats / jnp.linalg.norm(feats, axis=-1, keepdims=True)   # SupCon uses L2-normalized feats
    labels = jax.random.randint(k2, (bsz,), 0, 4, dtype=jnp.int32)

    out = jax.block_until_ready(supcon_loss(feats, labels, temperature=temperature))
    ref = _reference_supcon(feats, labels, temperature=temperature)
    assert jnp.allclose(out, ref, atol=1e-4, rtol=1e-4), (out, ref)

    # --- unsupervised SimCLR degenerate case: labels=None -> mask = eye(bsz) -
    out_u = jax.block_until_ready(supcon_loss(feats, None, temperature=temperature))
    ref_u = _reference_supcon(feats, None, temperature=temperature)
    assert jnp.allclose(out_u, ref_u, atol=1e-4, rtol=1e-4), (out_u, ref_u)

    # --- contrast_mode='one' -------------------------------------------------
    out_o = jax.block_until_ready(
        supcon_loss(feats, labels, temperature=temperature, contrast_mode="one"))
    ref_o = _reference_supcon(feats, labels, temperature=temperature,
                              contrast_mode="one")
    assert jnp.allclose(out_o, ref_o, atol=1e-4, rtol=1e-4), (out_o, ref_o)

    # --- multi-tile + padding path: 144 anchors, TB=128 -> grid of 2 --------
    bsz2 = 72
    feats2 = jax.random.normal(k3, (bsz2, n_views, dim), dtype=jnp.float32)
    feats2 = feats2 / jnp.linalg.norm(feats2, axis=-1, keepdims=True)
    labels2 = jax.random.randint(k4, (bsz2,), 0, 10, dtype=jnp.int32)
    out2 = jax.block_until_ready(
        supcon_loss(feats2, labels2, temperature=temperature, block_rows=128))
    ref2 = _reference_supcon(feats2, labels2, temperature=temperature)
    assert jnp.allclose(out2, ref2, atol=1e-4, rtol=1e-4), (out2, ref2)

    # --- bf16 features straight into the MXU (f32 accumulation) -------------
    out_bf = jax.block_until_ready(
        supcon_loss(feats.astype(jnp.bfloat16), labels, temperature=temperature))
    assert jnp.isfinite(out_bf)
    assert jnp.allclose(out_bf, ref, atol=0.25, rtol=0.05), (out_bf, ref)

    print("KERNEL_OK")
</pallas_src>

<mosaic_0001>
module attributes {stable_mosaic.version = 11 : i64} {
  func.func @_supcon_kernel(%arg0: i32, %arg1: memref<1x16xi32, #tpu.memory_space<vmem>>, %arg2: memref<16x1xi32, #tpu.memory_space<vmem>>, %arg3: memref<32x16xf32, #tpu.memory_space<vmem>>, %arg4: memref<16x32xf32, #tpu.memory_space<vmem>>, %arg5: memref<1x16xf32, #tpu.memory_space<vmem>>) attributes {dimension_semantics = [#tpu.dimension_semantics<parallel>], iteration_bounds = array<i64: 1>, scalar_prefetch = 0 : i64, scratch_operands = 0 : i64, tpu.core_type = #tpu.core_type<tc>, window_params = [{transform_indices = @transform_0, window_bounds = array<i64: 1, 16>}, {pipeline_mode = #tpu.pipeline_mode<synchronous>, transform_indices = @transform_1, window_bounds = array<i64: 16, 1>}, {transform_indices = @transform_2, window_bounds = array<i64: 32, 16>}, {pipeline_mode = #tpu.pipeline_mode<synchronous>, transform_indices = @transform_3, window_bounds = array<i64: 16, 32>}, {transform_indices = @transform_4, window_bounds = array<i64: 1, 16>}]} {
    %c0 = arith.constant 0 : index
    %c0_0 = arith.constant 0 : index
    %0 = vector.load %arg4[%c0, %c0_0] : memref<16x32xf32, #tpu.memory_space<vmem>>, vector<16x32xf32>
    %c0_1 = arith.constant 0 : index
    %c0_2 = arith.constant 0 : index
    %1 = vector.load %arg3[%c0_1, %c0_2] : memref<32x16xf32, #tpu.memory_space<vmem>>, vector<32x16xf32>
    %cst = arith.constant dense<0.000000e+00> : vector<16x16xf32>
    %2 = tpu.matmul %0, %1, %cst {dimension_numbers = #tpu.dot_dimension_numbers<[1], [0], [0], [1], [0, 0, 1, 1], [], []>} : vector<16x32xf32>, vector<32x16xf32>, vector<16x16xf32> -> vector<16x16xf32>
    %cst_3 = arith.constant 14.2857141 : f32
    %3 = vector.broadcast %cst_3 : f32 to vector<16x16xf32>
    %4 = arith.mulf %2, %3 : vector<16x16xf32>
    %c0_4 = arith.constant 0 : index
    %c0_5 = arith.constant 0 : index
    %5 = vector.load %arg1[%c0_4, %c0_5] : memref<1x16xi32, #tpu.memory_space<vmem>>, vector<1x16xi32>
    %c0_6 = arith.constant 0 : index
    %c0_7 = arith.constant 0 : index
    %6 = vector.load %arg2[%c0_6, %c0_7] : memref<16x1xi32, #tpu.memory_space<vmem>>, vector<16x1xi32>
    %c16_i32 = arith.constant 16 : i32
    %7 = arith.muli %arg0, %c16_i32 : i32
    %8 = tpu.iota {dimensions = array<i32: 1>} : vector<1x16xi32>
    %9 = vector.broadcast %7 : i32 to vector<1x16xi32>
    %10 = arith.addi %9, %8 : vector<1x16xi32>
    %11 = tpu.iota {dimensions = array<i32: 0>} : vector<16x1xi32>
    %12 = vector.broadcast %11 : vector<16x1xi32> to vector<16x16xi32>
    %13 = vector.broadcast %10 : vector<1x16xi32> to vector<16x16xi32>
    %14 = arith.cmpi ne, %12, %13 : vector<16x16xi32>
    %15 = vector.broadcast %6 : vector<16x1xi32> to vector<16x16xi32>
    %16 = vector.broadcast %5 : vector<1x16xi32> to vector<16x16xi32>
    %17 = arith.cmpi eq, %15, %16 : vector<16x16xi32>
    %18 = arith.andi %17, %14 : vector<16x16xi1>
    %cst_8 = arith.constant 0xFF800000 : f32
    %19 = vector.broadcast %cst_8 : f32 to vector<16x16xf32>
    %20 = arith.select %14, %4, %19 : vector<16x16xi1>, vector<16x16xf32>
    %cst_9 = arith.constant dense<0xFF800000> : vector<16xf32>
    %21 = vector.multi_reduction <maximumf>, %20, %cst_9 [0] : vector<16x16xf32> to vector<16xf32>
    %22 = vector.shape_cast %21 : vector<16xf32> to vector<1x16xf32>
    %23 = vector.broadcast %22 : vector<1x16xf32> to vector<16x16xf32>
    %24 = arith.subf %20, %23 : vector<16x16xf32>
    %25 = math.exp %24 : vector<16x16xf32>
    %cst_10 = arith.constant dense<0.000000e+00> : vector<16xf32>
    %26 = vector.multi_reduction <add>, %25, %cst_10 [0] : vector<16x16xf32> to vector<16xf32>
    %27 = vector.shape_cast %26 : vector<16xf32> to vector<1x16xf32>
    %28 = math.log %27 : vector<1x16xf32>
    %29 = arith.addf %22, %28 : vector<1x16xf32>
    %30 = arith.extui %18 : vector<16x16xi1> to vector<16x16xi32>
    %31 = arith.sitofp %30 : vector<16x16xi32> to vector<16x16xf32>
    %cst_11 = arith.constant dense<0.000000e+00> : vector<16xf32>
    %32 = vector.multi_reduction <add>, %31, %cst_11 [0] : vector<16x16xf32> to vector<16xf32>
    %33 = vector.shape_cast %32 : vector<16xf32> to vector<1x16xf32>
    %cst_12 = arith.constant 0.000000e+00 : f32
    %34 = vector.broadcast %cst_12 : f32 to vector<16x16xf32>
    %35 = arith.select %18, %4, %34 : vector<16x16xi1>, vector<16x16xf32>
    %cst_13 = arith.constant dense<0.000000e+00> : vector<16xf32>
    %36 = vector.multi_reduction <add>, %35, %cst_13 [0] : vector<16x16xf32> to vector<16xf32>
    %37 = vector.shape_cast %36 : vector<16xf32> to vector<1x16xf32>
    %38 = arith.divf %37, %33 : vector<1x16xf32>
    %39 = arith.subf %29, %38 : vector<1x16xf32>
    %c0_14 = arith.constant 0 : index
    %c0_15 = arith.constant 0 : index
    %40 = vector.load %arg5[%c0_14, %c0_15] : memref<1x16xf32, #tpu.memory_space<vmem>>, vector<1x16xf32>
    tpu.vector_store %arg5[%c0_14, %c0_15], %39 {strides = array<i32>} : memref<1x16xf32, #tpu.memory_space<vmem>>, vector<1x16xf32>,
    return
  }
  func.func @transform_0(%arg0: i32) -> (i32, i32) {
    %c0_i32 = arith.constant 0 : i32
    %c0_i32_0 = arith.constant 0 : i32
    return %c0_i32, %arg0 : i32, i32
  }
  func.func @transform_1(%arg0: i32) -> (i32, i32) {
    %c0_i32 = arith.constant 0 : i32
    %c0_i32_0 = arith.constant 0 : i32
    %c0_i32_1 = arith.constant 0 : i32
    return %c0_i32, %c0_i32_0 : i32, i32
  }
  func.func @transform_2(%arg0: i32) -> (i32, i32) {
    %c0_i32 = arith.constant 0 : i32
    %c0_i32_0 = arith.constant 0 : i32
    return %c0_i32, %arg0 : i32, i32
  }
  func.func @transform_3(%arg0: i32) -> (i32, i32) {
    %c0_i32 = arith.constant 0 : i32
    %c0_i32_0 = arith.constant 0 : i32
    %c0_i32_1 = arith.constant 0 : i32
    return %c0_i32, %c0_i32_0 : i32, i32
  }
  func.func @transform_4(%arg0: i32) -> (i32, i32) {
    %c0_i32 = arith.constant 0 : i32
    %c0_i32_0 = arith.constant 0 : i32
    return %c0_i32, %arg0 : i32, i32
  }
}

module attributes {stable_mosaic.version = 11 : i64} {
  func.func @_supcon_kernel(%arg0: i32, %arg1: memref<1x16xi32, #tpu.memory_space<vmem>>, %arg2: memref<16x1xi32, #tpu.memory_space<vmem>>, %arg3: memref<32x16xf32, #tpu.memory_space<vmem>>, %arg4: memref<16x32xf32, #tpu.memory_space<vmem>>, %arg5: memref<1x16xf32, #tpu.memory_space<vmem>>) attributes {dimension_semantics = [#tpu.dimension_semantics<parallel>], iteration_bounds = array<i64: 1>, scalar_prefetch = 0 : i64, scratch_operands = 0 : i64, tpu.core_type = #tpu.core_type<tc>, window_params = [{transform_indices = @transform_0, window_bounds = array<i64: 1, 16>}, {pipeline_mode = #tpu.pipeline_mode<synchronous>, transform_indices = @transform_1, window_bounds = array<i64: 16, 1>}, {transform_indices = @transform_2, window_bounds = array<i64: 32, 16>}, {pipeline_mode = #tpu.pipeline_mode<synchronous>, transform_indices = @transform_3, window_bounds = array<i64: 16, 32>}, {transform_indices = @transform_4, window_bounds = array<i64: 1, 16>}]} {
    %c0 = arith.constant 0 : index
    %c0_0 = arith.constant 0 : index
    %0 = vector.load %arg4[%c0, %c0_0] : memref<16x32xf32, #tpu.memory_space<vmem>>, vector<16x32xf32>
    %c0_1 = arith.constant 0 : index
    %c0_2 = arith.constant 0 : index
    %1 = vector.load %arg3[%c0_1, %c0_2] : memref<32x16xf32, #tpu.memory_space<vmem>>, vector<32x16xf32>
    %cst = arith.constant dense<0.000000e+00> : vector<16x16xf32>
    %2 = tpu.matmul %0, %1, %cst {dimension_numbers = #tpu.dot_dimension_numbers<[1], [0], [0], [1], [0, 0, 1, 1], [], []>} : vector<16x32xf32>, vector<32x16xf32>, vector<16x16xf32> -> vector<16x16xf32>
    %cst_3 = arith.constant 14.2857141 : f32
    %3 = vector.broadcast %cst_3 : f32 to vector<16x16xf32>
    %4 = arith.mulf %2, %3 : vector<16x16xf32>
    %c0_4 = arith.constant 0 : index
    %c0_5 = arith.constant 0 : index
    %5 = vector.load %arg1[%c0_4, %c0_5] : memref<1x16xi32, #tpu.memory_space<vmem>>, vector<1x16xi32>
    %c0_6 = arith.constant 0 : index
    %c0_7 = arith.constant 0 : index
    %6 = vector.load %arg2[%c0_6, %c0_7] : memref<16x1xi32, #tpu.memory_space<vmem>>, vector<16x1xi32>
    %c16_i32 = arith.constant 16 : i32
    %7 = arith.muli %arg0, %c16_i32 : i32
    %8 = tpu.iota {dimensions = array<i32: 1>} : vector<1x16xi32>
    %9 = vector.broadcast %7 : i32 to vector<1x16xi32>
    %10 = arith.addi %9, %8 : vector<1x16xi32>
    %11 = tpu.iota {dimensions = array<i32: 0>} : vector<16x1xi32>
    %12 = vector.broadcast %11 : vector<16x1xi32> to vector<16x16xi32>
    %13 = vector.broadcast %10 : vector<1x16xi32> to vector<16x16xi32>
    %14 = arith.cmpi ne, %12, %13 : vector<16x16xi32>
    %15 = vector.broadcast %6 : vector<16x1xi32> to vector<16x16xi32>
    %16 = vector.broadcast %5 : vector<1x16xi32> to vector<16x16xi32>
    %17 = arith.cmpi eq, %15, %16 : vector<16x16xi32>
    %18 = arith.andi %17, %14 : vector<16x16xi1>
    %cst_8 = arith.constant 0xFF800000 : f32
    %19 = vector.broadcast %cst_8 : f32 to vector<16x16xf32>
    %20 = arith.select %14, %4, %19 : vector<16x16xi1>, vector<16x16xf32>
    %cst_9 = arith.constant dense<0xFF800000> : vector<16xf32>
    %21 = vector.multi_reduction <maximumf>, %20, %cst_9 [0] : vector<16x16xf32> to vector<16xf32>
    %22 = vector.shape_cast %21 : vector<16xf32> to vector<1x16xf32>
    %23 = vector.broadcast %22 : vector<1x16xf32> to vector<16x16xf32>
    %24 = arith.subf %20, %23 : vector<16x16xf32>
    %25 = math.exp %24 : vector<16x16xf32>
    %cst_10 = arith.constant dense<0.000000e+00> : vector<16xf32>
    %26 = vector.multi_reduction <add>, %25, %cst_10 [0] : vector<16x16xf32> to vector<16xf32>
    %27 = vector.shape_cast %26 : vector<16xf32> to vector<1x16xf32>
    %28 = math.log %27 : vector<1x16xf32>
    %29 = arith.addf %22, %28 : vector<1x16xf32>
    %30 = arith.extui %18 : vector<16x16xi1> to vector<16x16xi32>
    %31 = arith.sitofp %30 : vector<16x16xi32> to vector<16x16xf32>
    %cst_11 = arith.constant dense<0.000000e+00> : vector<16xf32>
    %32 = vector.multi_reduction <add>, %31, %cst_11 [0] : vector<16x16xf32> to vector<16xf32>
    %33 = vector.shape_cast %32 : vector<16xf32> to vector<1x16xf32>
    %cst_12 = arith.constant 0.000000e+00 : f32
    %34 = vector.broadcast %cst_12 : f32 to vector<16x16xf32>
    %35 = arith.select %18, %4, %34 : vector<16x16xi1>, vector<16x16xf32>
    %cst_13 = arith.constant dense<0.000000e+00> : vector<16xf32>
    %36 = vector.multi_reduction <add>, %35, %cst_13 [0] : vector<16x16xf32> to vector<16xf32>
    %37 = vector.shape_cast %36 : vector<16xf32> to vector<1x16xf32>
    %38 = arith.divf %37, %33 : vector<1x16xf32>
    %39 = arith.subf %29, %38 : vector<1x16xf32>
    %c0_14 = arith.constant 0 : index
    %c0_15 = arith.constant 0 : index
    %40 = vector.load %arg5[%c0_14, %c0_15] : memref<1x16xf32, #tpu.memory_space<vmem>>, vector<1x16xf32>
    tpu.vector_store %arg5[%c0_14, %c0_15], %39 {strides = array<i32>} : memref<1x16xf32, #tpu.memory_space<vmem>>, vector<1x16xf32>,
    return
  }
  func.func @transform_0(%arg0: i32) -> (i32, i32) {
    %c0_i32 = arith.constant 0 : i32
    %c0_i32_0 = arith.constant 0 : i32
    return %c0_i32, %arg0 : i32, i32
  }
  func.func @transform_1(%arg0: i32) -> (i32, i32) {
    %c0_i32 = arith.constant 0 : i32
    %c0_i32_0 = arith.constant 0 : i32
    %c0_i32_1 = arith.constant 0 : i32
    return %c0_i32, %c0_i32_0 : i32, i32
  }
  func.func @transform_2(%arg0: i32) -> (i32, i32) {
    %c0_i32 = arith.constant 0 : i32
    %c0_i32_0 = arith.constant 0 : i32
    return %c0_i32, %arg0 : i32, i32
  }
  func.func @transform_3(%arg0: i32) -> (i32, i32) {
    %c0_i32 = arith.constant 0 : i32
    %c0_i32_0 = arith.constant 0 : i32
    %c0_i32_1 = arith.constant 0 : i32
    return %c0_i32, %c0_i32_0 : i32, i32
  }
  func.func @transform_4(%arg0: i32) -> (i32, i32) {
    %c0_i32 = arith.constant 0 : i32
    %c0_i32_0 = arith.constant 0 : i32
    return %c0_i32, %arg0 : i32, i32
  }
}

</mosaic_0001>

<bundles_post_ra>
// kernel: tpu_custom_call.1
= control target key start
LH: loop header
LB: loop body
LE: loop exit
PB: predicated region body
PF: predicated region fallthrough
CT: control target
= control target key end

     0   :  { %v215_v3 = vmov 0   ;;  %s301_s0 = inlined_call_operand.vmem [shape: s32[1,16], index: 0, kind: input, shape index: {}]   ;;  %s302_s1 = inlined_call_operand.vmem [shape: s32[16,1], index: 1, kind: input, shape index: {}]   ;;  %s303_s2 = inlined_call_operand.vmem [shape: f32[32,16], index: 2, kind: input, shape index: {}]   ;;  %s304_s3 = inlined_call_operand.vmem [shape: f32[16,32], index: 3, kind: input, shape index: {}]   ;;  %s305_s4 = inlined_call_operand.hbm [shape: f32[1,16], index: 4, kind: output, shape index: {}]  }
   0x1   :  { %v23_v0 = vld [vmem:[%s303_s2 + $0x18] sm:$0xff]  ;;  %v57_v1 = vld [vmem:[%s302_s1] sm:$0xff]  ;;  %v22_v2 = vld [vmem:[%s303_s2 + $0x10] sm:$0xff]  ;;  %179 = vset.pattern.permute.xlu0 %v215_v3 }
   0x2   :  { %43 = vmatpush.msra.mxu0 %v23_v0  ;;  %172 = vmatpush.msra.mxu1 %v23_v0  ;;  %v21_v4 = vld [vmem:[%s303_s2 + $0x8] sm:$0xff] }
   0x3   :  { %70 = vperm.xlu0 %179, %v57_v1  }
   0x4   :  { %44 = vmatpush.msra.mxu0 %v22_v2 }
   0x5   :  { %9 = vsyncpa [#allocation3], 0  ;;  %173 = vmatpush.msra.mxu1 %v22_v2  ;;  %v20_v5 = vld [vmem:[%s303_s2] sm:$0xff]  ;;  %vm24_vm0 = vcmask 261120   ;;  %v19_v7 = vld [vmem:[%s304_s3 + $0x8] sm:$0xff]  ;;  %v60_v9 = vlaneseq  ;;  %vm82_vm4 = vcmask 130048  }
   0x6   :  { %45 = vmatpush.msra.mxu0 %v21_v4  ;;  %v18_v6 = vld [vmem:[%s304_s3] sm:$0xff]  ;;  %v58_v8 = vld [vmem:[%s302_s1 + $0x8] sm:$0xff]  ;;  %v216_v16 = vmov 0.0   ;;  %s159_s7 = sshll.u32 %s305_s4, 4  ;;  %vm150_vm12 = vcmask 122880   ;;  %s160_s7 = int_to_ptr.hbm [resolvable:$true] %s159_s7 }
   0x7   :  { %174 = vmatpush.msra.mxu1 %v21_v4  ;;  %v61_v10 = vand.u32 127, %v60_v9  ;;  %v180_v11 = vld [vmem:[%s301_s0] ss:$0 sm:$0xff]  ;;  %v65_v12 = vshrl.u32 %v60_v9, 7  ;;  %s217_s0 = smov [#allocation2]  }
   0x8   :  { %46 = vmatpush.msra.mxu0 %v20_v5  ;;  %s157_s1 = sshll.u32 %s217_s0, 4  ;;  %s158_s1 = int_to_ptr.vmem [resolvable:$true] %s157_s1 }
   0x9   :  { %175 = vmatpush.msra.mxu1 %v20_v5  ;;  %168 = vmatmul.msk.f32.vlgmr.msra.gmra.mxu0 %vm24_vm0, %v18_v6  ;;  %vm67_vm1 = vcmp.ne.s32.totalorder %v65_v12, %v61_v10  ;;  %v66_v14 = vadd.s32 8, %v65_v12 }
   0xa   :  { %169 = vmatmul.msk.f32.vlgmr.msra.gmra.mxu1 %vm24_vm0, %v19_v7 }
   0xb   :  { %73 = vperm.xlu0 %179, %v58_v8   ;;  %vm68_vm5 = vcmp.ne.s32.totalorder %v66_v14, %v61_v10 }
  0x75   :  { %v71_v13 = vpop.permute.xlu0 %70 }
  0x76   :  { %vm76_vm2 = vcmp.eq.s32.totalorder %v71_v13, %v180_v11 }
  0x77   :  { %vm271_vm3 = vmand %vm76_vm2, %vm67_vm1 }
  0x78   :  { %v170_v17 = vsel %vm271_vm3, 1.0, %v216_v16 }
  0x79   :  { %v114_v19 = vsel %vm82_vm4, %v170_v17, 0.0 }
  0x7d   :  { %v74_v18 = vpop.permute.xlu0 %73 }
  0x7e   :  { %vm77_vm6 = vcmp.eq.s32.totalorder %v74_v18, %v180_v11 }
  0x7f   :  { %vm279_vm7 = vmand %vm77_vm6, %vm68_vm5 }
  0x80   :  { %v171_v21 = vsel %vm279_vm7, 1.0, %v216_v16 }
  0x81   :  { %v115_v22 = vsel %vm82_vm4, %v171_v21, 0.0 }
  0x82   :  { %v116_v23 = vadd.f32 %v115_v22, %v114_v19 }
  0x84   :  { %v117_v24 = vrot.slane %v116_v23, 4 }
  0x86   :  { %v48_v25 = vpop.f32.mrf.mxu0  ;;  %v118_v29 = vadd.f32 %v117_v24, %v116_v23 }
  0x87   :  { %v54_v26 = vmul.f32 14.285714, %v48_v25  ;;  %v51_v27 = vpop.f32.mrf.mxu1 }
  0x88   :  { %v55_v28 = vmul.f32 14.285714, %v51_v27  ;;  %v119_v35 = vrot.slane %v118_v29, 2 }
  0x89   :  { %v80_v30 = vsel %vm67_vm1, %v54_v26, -inf  ;;  %v123_v49 = vsel %vm271_vm3, %v54_v26, 0.0 }
  0x8a   :  { %v83_v31 = vsel %vm82_vm4, %v80_v30, -inf  ;;  %v81_v32 = vsel %vm68_vm5, %v55_v28, -inf  ;;  %v120_v38 = vadd.f32 %v119_v35, %v118_v29  ;;  %v124_v50 = vsel %vm279_vm7, %v55_v28, 0.0 }
  0x8b   :  { %v84_v33 = vsel %vm82_vm4, %v81_v32, -inf  ;;  %v125_v51 = vsel %vm82_vm4, %v123_v49, 0.0  ;;  %v126_v52 = vsel %vm82_vm4, %v124_v50, 0.0 }
  0x8c   :  { %v85_v34 = vmax.f32 %v83_v31, %v84_v33  ;;  %v121_v41 = vrot.slane %v120_v38, 1  ;;  %v127_v55 = vadd.f32 %v126_v52, %v125_v51 }
  0x8e   :  { %v86_v36 = vrot.slane %v85_v34, 4  ;;  %v122_v44 = vadd.f32 %v121_v41, %v120_v38  ;;  %v128_v60 = vrot.slane %v127_v55, 4 }
  0x90   :  { %v87_v37 = vmax.f32 %v85_v34, %v86_v36  ;;  %181 = vrcp.f32 %v122_v44  ;;  %v129_v0 = vadd.f32 %v128_v60, %v127_v55  ;;  %vm139_vm8 = vweird.f32 %v122_v44 }
  0x91   :  { %v145_v8 = vand.u32 2147483648, %v122_v44  ;;  %v143_v11 = vand.u32 2147483647, %v122_v44 }
  0x92   :  { %v88_v39 = vrot.slane %v87_v37, 2  ;;  %v130_v4 = vrot.slane %v129_v0, 2 }
  0x93   :  { %v146_v12 = vor.u32 1.1754944e-38, %v145_v8  ;;  %vm144_vm11 = vcmp.eq.f32.partialorder %v143_v11, 8.507059e+37 }
  0x94   :  { %v89_v40 = vmax.f32 %v87_v37, %v88_v39  ;;  %v131_v9 = vadd.f32 %v130_v4, %v129_v0 }
  0x96   :  { %v90_v42 = vrot.slane %v89_v40, 1  ;;  %v182_v53 = vpop.eup %181  ;;  %v132_v13 = vrot.slane %v131_v9, 1 }
  0x97   :  { %v135_v61 = vmul.f32 %v182_v53, %v122_v44  ;;  %vm140_vm9 = vweird.f32 %v182_v53 }
  0x98   :  { %v91_v43 = vmax.f32 %v89_v40, %v90_v42  ;;  %vm141_vm10 = vmor %vm139_vm8, %vm140_vm9  ;;  %v133_v18 = vadd.f32 %v132_v13, %v131_v9 }
  0x99   :  { %v136_v1 = vsub.f32 1.0, %v135_v61 }
  0x9a   :  { %v92_v45 = vsub.f32 %v80_v30, %v91_v43  ;;  %v93_v46 = vsub.f32 %v81_v32, %v91_v43 }
  0x9b   :  { %v137_v5 = vmul.f32 %v182_v53, %v136_v1 }
  0x9c   :  { %v94_v47 = vmul.f32 1.442695, %v92_v45  ;;  %v96_v48 = vmul.f32 1.442695, %v93_v46 }
  0x9d   :  { %v138_v10 = vadd.f32 %v182_v53, %v137_v5 }
  0x9e   :  { %183 = vpow2.f32 %v94_v47 }
  0x9f   :  { %185 = vpow2.f32 %v96_v48  ;;  %v142_v14 = vsel %vm141_vm10, %v182_v53, %v138_v10 }
  0xa0   :  { %v147_v16 = vsel %vm144_vm11, %v146_v12, %v142_v14 }
  0xa1   :  { %v148_v20 = vmul.f32 %v147_v16, %v133_v18 }
  0xa4   :  { %v184_v54 = vpop.eup %183 }
  0xa5   :  { %v186_v56 = vpop.eup %185  ;;  %v98_v57 = vsel %vm82_vm4, %v184_v54, 0.0 }
  0xa6   :  { %v99_v58 = vsel %vm82_vm4, %v186_v56, 0.0 }
  0xa7   :  { %v100_v59 = vadd.f32 %v99_v58, %v98_v57 }
  0xa9   :  { %v101_v62 = vrot.slane %v100_v59, 4 }
  0xab   :  { %v102_v63 = vadd.f32 %v101_v62, %v100_v59 }
  0xad   :  { %v103_v2 = vrot.slane %v102_v63, 2 }
  0xaf   :  { %v104_v3 = vadd.f32 %v103_v2, %v102_v63 }
  0xb1   :  { %v105_v6 = vrot.slane %v104_v3, 1 }
  0xb3   :  { %v106_v7 = vadd.f32 %v105_v6, %v104_v3 }
  0xb5   :  { %187 = vlog2.f32 %v106_v7 }
  0xbb   :  { %v188_v15 = vpop.eup %187 }
  0xbc   :  { %v108_v17 = vmul.f32 0.6931472, %v188_v15 }
  0xbe   :  { %v109_v19 = vadd.f32 %v108_v17, %v91_v43 }
  0xc0   :  { %v149_v21 = vsub.f32 %v109_v19, %v148_v20 }
  0xc2   :  { %151 = vst.msk [vmem:[#allocation2] sm:$0x1] %vm150_vm12, %v149_v21 }
  0xc3   :  { %162 = dma.vmem_to_hbm [thread:$0]  %s158_s1, 16, %s160_s7, [#allocation3]  }
  0xc4   :  { %213 = dma.done.wait [#allocation3], 16  }
  0xc5   :  { %214 = vsyncadd [#allocation3], 4294967280 }
  0xc6   :  { %167 = vsyncpa [#allocation3], 1 }

// kernel: tpu_custom_call.1
= control target key start
LH: loop header
LB: loop body
LE: loop exit
PB: predicated region body
PF: predicated region fallthrough
CT: control target
= control target key end

     0   :  { %v215_v3 = vmov 0   ;;  %s301_s0 = inlined_call_operand.vmem [shape: s32[1,16], index: 0, kind: input, shape index: {}]   ;;  %s302_s1 = inlined_call_operand.vmem [shape: s32[16,1], index: 1, kind: input, shape index: {}]   ;;  %s303_s2 = inlined_call_operand.vmem [shape: f32[32,16], index: 2, kind: input, shape index: {}]   ;;  %s304_s3 = inlined_call_operand.vmem [shape: f32[16,32], index: 3, kind: input, shape index: {}]   ;;  %s305_s4 = inlined_call_operand.hbm [shape: f32[1,16], index: 4, kind: output, shape index: {}]  }
   0x1   :  { %v23_v0 = vld [vmem:[%s303_s2 + $0x18] sm:$0xff]  ;;  %v57_v1 = vld [vmem:[%s302_s1] sm:$0xff]  ;;  %v22_v2 = vld [vmem:[%s303_s2 + $0x10] sm:$0xff]  ;;  %179 = vset.pattern.permute.xlu0 %v215_v3 }
   0x2   :  { %43 = vmatpush.msra.mxu0 %v23_v0  ;;  %172 = vmatpush.msra.mxu1 %v23_v0  ;;  %v21_v4 = vld [vmem:[%s303_s2 + $0x8] sm:$0xff] }
   0x3   :  { %70 = vperm.xlu0 %179, %v57_v1  }
   0x4   :  { %44 = vmatpush.msra.mxu0 %v22_v2 }
   0x5   :  { %9 = vsyncpa [#allocation3], 0  ;;  %173 = vmatpush.msra.mxu1 %v22_v2  ;;  %v20_v5 = vld [vmem:[%s303_s2] sm:$0xff]  ;;  %vm24_vm0 = vcmask 261120   ;;  %v19_v7 = vld [vmem:[%s304_s3 + $0x8] sm:$0xff]  ;;  %v60_v9 = vlaneseq  ;;  %vm82_vm4 = vcmask 130048  }
   0x6   :  { %45 = vmatpush.msra.mxu0 %v21_v4  ;;  %v18_v6 = vld [vmem:[%s304_s3] sm:$0xff]  ;;  %v58_v8 = vld [vmem:[%s302_s1 + $0x8] sm:$0xff]  ;;  %v216_v16 = vmov 0.0   ;;  %s159_s7 = sshll.u32 %s305_s4, 4  ;;  %vm150_vm12 = vcmask 122880   ;;  %s160_s7 = int_to_ptr.hbm [resolvable:$true] %s159_s7 }
   0x7   :  { %174 = vmatpush.msra.mxu1 %v21_v4  ;;  %v61_v10 = vand.u32 127, %v60_v9  ;;  %v180_v11 = vld [vmem:[%s301_s0] ss:$0 sm:$0xff]  ;;  %v65_v12 = vshrl.u32 %v60_v9, 7  ;;  %s217_s0 = smov [#allocation2]  }
   0x8   :  { %46 = vmatpush.msra.mxu0 %v20_v5  ;;  %s157_s1 = sshll.u32 %s217_s0, 4  ;;  %s158_s1 = int_to_ptr.vmem [resolvable:$true] %s157_s1 }
   0x9   :  { %175 = vmatpush.msra.mxu1 %v20_v5  ;;  %168 = vmatmul.msk.f32.vlgmr.msra.gmra.mxu0 %vm24_vm0, %v18_v6  ;;  %vm67_vm1 = vcmp.ne.s32.totalorder %v65_v12, %v61_v10  ;;  %v66_v14 = vadd.s32 8, %v65_v12 }
   0xa   :  { %169 = vmatmul.msk.f32.vlgmr.msra.gmra.mxu1 %vm24_vm0, %v19_v7 }
   0xb   :  { %73 = vperm.xlu0 %179, %v58_v8   ;;  %vm68_vm5 = vcmp.ne.s32.totalorder %v66_v14, %v61_v10 }
  0x75   :  { %v71_v13 = vpop.permute.xlu0 %70 }
  0x76   :  { %vm76_vm2 = vcmp.eq.s32.totalorder %v71_v13, %v180_v11 }
  0x77   :  { %vm271_vm3 = vmand %vm76_vm2, %vm67_vm1 }
  0x78   :  { %v170_v17 = vsel %vm271_vm3, 1.0, %v216_v16 }
  0x79   :  { %v114_v19 = vsel %vm82_vm4, %v170_v17, 0.0 }
  0x7d   :  { %v74_v18 = vpop.permute.xlu0 %73 }
  0x7e   :  { %vm77_vm6 = vcmp.eq.s32.totalorder %v74_v18, %v180_v11 }
  0x7f   :  { %vm279_vm7 = vmand %vm77_vm6, %vm68_vm5 }
  0x80   :  { %v171_v21 = vsel %vm279_vm7, 1.0, %v216_v16 }
  0x81   :  { %v115_v22 = vsel %vm82_vm4, %v171_v21, 0.0 }
  0x82   :  { %v116_v23 = vadd.f32 %v115_v22, %v114_v19 }
  0x84   :  { %v117_v24 = vrot.slane %v116_v23, 4 }
  0x86   :  { %v48_v25 = vpop.f32.mrf.mxu0  ;;  %v118_v29 = vadd.f32 %v117_v24, %v116_v23 }
  0x87   :  { %v54_v26 = vmul.f32 14.285714, %v48_v25  ;;  %v51_v27 = vpop.f32.mrf.mxu1 }
  0x88   :  { %v55_v28 = vmul.f32 14.285714, %v51_v27  ;;  %v119_v35 = vrot.slane %v118_v29, 2 }
  0x89   :  { %v80_v30 = vsel %vm67_vm1, %v54_v26, -inf  ;;  %v123_v49 = vsel %vm271_vm3, %v54_v26, 0.0 }
  0x8a   :  { %v83_v31 = vsel %vm82_vm4, %v80_v30, -inf  ;;  %v81_v32 = vsel %vm68_vm5, %v55_v28, -inf  ;;  %v120_v38 = vadd.f32 %v119_v35, %v118_v29  ;;  %v124_v50 = vsel %vm279_vm7, %v55_v28, 0.0 }
  0x8b   :  { %v84_v33 = vsel %vm82_vm4, %v81_v32, -inf  ;;  %v125_v51 = vsel %vm82_vm4, %v123_v49, 0.0  ;;  %v126_v52 = vsel %vm82_vm4, %v124_v50, 0.0 }
  0x8c   :  { %v85_v34 = vmax.f32 %v83_v31, %v84_v33  ;;  %v121_v41 = vrot.slane %v120_v38, 1  ;;  %v127_v55 = vadd.f32 %v126_v52, %v125_v51 }
  0x8e   :  { %v86_v36 = vrot.slane %v85_v34, 4  ;;  %v122_v44 = vadd.f32 %v121_v41, %v120_v38  ;;  %v128_v60 = vrot.slane %v127_v55, 4 }
  0x90   :  { %v87_v37 = vmax.f32 %v85_v34, %v86_v36  ;;  %181 = vrcp.f32 %v122_v44  ;;  %v129_v0 = vadd.f32 %v128_v60, %v127_v55  ;;  %vm139_vm8 = vweird.f32 %v122_v44 }
  0x91   :  { %v145_v8 = vand.u32 2147483648, %v122_v44  ;;  %v143_v11 = vand.u32 2147483647, %v122_v44 }
  0x92   :  { %v88_v39 = vrot.slane %v87_v37, 2  ;;  %v130_v4 = vrot.slane %v129_v0, 2 }
  0x93   :  { %v146_v12 = vor.u32 1.1754944e-38, %v145_v8  ;;  %vm144_vm11 = vcmp.eq.f32.partialorder %v143_v11, 8.507059e+37 }
  0x94   :  { %v89_v40 = vmax.f32 %v87_v37, %v88_v39  ;;  %v131_v9 = vadd.f32 %v130_v4, %v129_v0 }
  0x96   :  { %v90_v42 = vrot.slane %v89_v40, 1  ;;  %v182_v53 = vpop.eup %181  ;;  %v132_v13 = vrot.slane %v131_v9, 1 }
  0x97   :  { %v135_v61 = vmul.f32 %v182_v53, %v122_v44  ;;  %vm140_vm9 = vweird.f32 %v182_v53 }
  0x98   :  { %v91_v43 = vmax.f32 %v89_v40, %v90_v42  ;;  %vm141_vm10 = vmor %vm139_vm8, %vm140_vm9  ;;  %v133_v18 = vadd.f32 %v132_v13, %v131_v9 }
  0x99   :  { %v136_v1 = vsub.f32 1.0, %v135_v61 }
  0x9a   :  { %v92_v45 = vsub.f32 %v80_v30, %v91_v43  ;;  %v93_v46 = vsub.f32 %v81_v32, %v91_v43 }
  0x9b   :  { %v137_v5 = vmul.f32 %v182_v53, %v136_v1 }
  0x9c   :  { %v94_v47 = vmul.f32 1.442695, %v92_v45  ;;  %v96_v48 = vmul.f32 1.442695, %v93_v46 }
  0x9d   :  { %v138_v10 = vadd.f32 %v182_v53, %v137_v5 }
  0x9e   :  { %183 = vpow2.f32 %v94_v47 }
  0x9f   :  { %185 = vpow2.f32 %v96_v48  ;;  %v142_v14 = vsel %vm141_vm10, %v182_v53, %v138_v10 }
  0xa0   :  { %v147_v16 = vsel %vm144_vm11, %v146_v12, %v142_v14 }
  0xa1   :  { %v148_v20 = vmul.f32 %v147_v16, %v133_v18 }
  0xa4   :  { %v184_v54 = vpop.eup %183 }
  0xa5   :  { %v186_v56 = vpop.eup %185  ;;  %v98_v57 = vsel %vm82_vm4, %v184_v54, 0.0 }
  0xa6   :  { %v99_v58 = vsel %vm82_vm4, %v186_v56, 0.0 }
  0xa7   :  { %v100_v59 = vadd.f32 %v99_v58, %v98_v57 }
  0xa9   :  { %v101_v62 = vrot.slane %v100_v59, 4 }
  0xab   :  { %v102_v63 = vadd.f32 %v101_v62, %v100_v59 }
  0xad   :  { %v103_v2 = vrot.slane %v102_v63, 2 }
  0xaf   :  { %v104_v3 = vadd.f32 %v103_v2, %v102_v63 }
  0xb1   :  { %v105_v6 = vrot.slane %v104_v3, 1 }
  0xb3   :  { %v106_v7 = vadd.f32 %v105_v6, %v104_v3 }
  0xb5   :  { %187 = vlog2.f32 %v106_v7 }
  0xbb   :  { %v188_v15 = vpop.eup %187 }
  0xbc   :  { %v108_v17 = vmul.f32 0.6931472, %v188_v15 }
  0xbe   :  { %v109_v19 = vadd.f32 %v108_v17, %v91_v43 }
  0xc0   :  { %v149_v21 = vsub.f32 %v109_v19, %v148_v20 }
  0xc2   :  { %151 = vst.msk [vmem:[#allocation2] sm:$0x1] %vm150_vm12, %v149_v21 }
  0xc3   :  { %162 = dma.vmem_to_hbm [thread:$0]  %s158_s1, 16, %s160_s7, [#allocation3]  }
  0xc4   :  { %213 = dma.done.wait [#allocation3], 16  }
  0xc5   :  { %214 = vsyncadd [#allocation3], 4294967280 }
  0xc6   :  { %167 = vsyncpa [#allocation3], 1 }

</bundles_post_ra>
